<compile_context>
chip_gen: v6e
topology: v6e:2x2x1
jax: 0.10.0
libtpu: 0.0.40
codegen_flags: <defaults>
</compile_context>

<pallas_src>
import functools
import math

import jax
import jax.numpy as jnp
from jax.experimental import pallas as pl
from jax.experimental.pallas import tpu as pltpu


def _addmm_kernel(x_ref, w_ref, b_ref, o_ref, *, n_total, tk, precision):
    """Grid step (i, j, k): o[i,j] += x[i,k] @ w[k,j], bias folded into init.

    The output BlockSpec maps to the same (i, j) block for every k, so the f32
    output tile stays resident in VMEM across the reduction and doubles as the
    accumulator.
    """
    k = pl.program_id(2)

    # Fold the bias into the accumulator init: saves a full tm x tn
    # read-add-write pass over the output tile plus the epilogue branch.
    @pl.when(k == 0)
    def _():
        o_ref[...] = jnp.broadcast_to(b_ref[...], o_ref.shape)

    x = x_ref[...]
    w = w_ref[...]

    rem = n_total % tk
    if rem != 0:
        # K tail: contents of a partial *input* block beyond the array edge
        # are undefined and would corrupt the reduction -> zero both operands'
        # tail on the last k step. (B/M tails need no masking: partial
        # *output* blocks are store-masked by Pallas.)
        is_last = k == pl.num_programs(2) - 1
        limit = jnp.where(is_last, rem, tk)
        kcol = jax.lax.broadcasted_iota(jnp.int32, x.shape, 1)
        krow = jax.lax.broadcasted_iota(jnp.int32, w.shape, 0)
        x = jnp.where(kcol < limit, x, 0.0)
        w = jnp.where(krow < limit, w, 0.0)

    o_ref[...] += jnp.dot(
        x, w, preferred_element_type=jnp.float32, precision=precision
    )


def _round_up(x, m):
    return (x + m - 1) // m * m


def _balanced_tile(dim, cap, align):
    """Balanced tile <= cap: split `dim` into ceil(dim/cap) near-equal tiles,
    rounded up to `align`. Padding waste is bounded by one alignment unit per
    tile (vs. up to ~2x from cap-then-round-up)."""
    num = max(1, math.ceil(dim / cap))
    return _round_up(math.ceil(dim / num), align)


@functools.partial(
    jax.jit,
    static_argnames=("tm", "tn", "tk", "precision", "vmem_limit_bytes"),
)
def addmm(x, w, b, *, tm=None, tn=None, tk=None, precision=None,
          vmem_limit_bytes=None):
    """Compute x @ w + b with a tiled Pallas TPU kernel (torch.addmm semantics).

    x: (B, N) float32
    w: (N, M) float32
    b: (M,)   float32
    returns (B, M) float32

    precision: forwarded to jnp.dot. Pass jax.lax.Precision.HIGHEST for the
    closest numerics to torch's true-f32 addmm (slower on the MXU).
    """
    B, N = x.shape
    N2, M = w.shape
    assert N == N2 and b.shape == (M,)

    # --- tile selection ---------------------------------------------------
    # tm: sublane-aligned rows; tn: lane-dense output cols; tk: deep reduction
    # panel (fewer grid steps and fewer f32 accumulate passes on the output
    # tile). At the caps the double-buffered footprint is ~7 MiB (f32), well
    # inside the default scoped VMEM of v5e/v6e/v7x.
    tm = tm if tm is not None else _balanced_tile(B, 256, 8)
    tn = tn if tn is not None else _balanced_tile(M, 512, 128)
    tk = tk if tk is not None else _balanced_tile(N, 1024, 128)

    gi, gj, gk = pl.cdiv(B, tm), pl.cdiv(M, tn), pl.cdiv(N, tk)

    # v7x shards the "parallel" grid axes over 2 TensorCores; avoid a
    # (1, 1, K) grid leaving one idle. Only split when it divides evenly (no
    # new padding); the extra grid step is negligible on single-TC v5e/v6e.
    if gi == 1 and gj == 1:
        if tn >= 256 and tn % 256 == 0:
            tn //= 2
            gj = pl.cdiv(M, tn)
        elif tm >= 16 and tm % 16 == 0:
            tm //= 2
            gi = pl.cdiv(B, tm)

    # Bias presented as (1, M) so it tiles along lanes (reshape is free).
    b2d = b.reshape(1, M)

    kernel = functools.partial(
        _addmm_kernel, n_total=N, tk=tk, precision=precision
    )

    cp_kwargs = dict(dimension_semantics=("parallel", "parallel", "arbitrary"))
    if vmem_limit_bytes is not None:
        cp_kwargs["vmem_limit_bytes"] = vmem_limit_bytes

    cost = pl.CostEstimate(
        flops=2 * B * N * M,
        bytes_accessed=4 * (B * N + N * M + B * M + M),
        transcendentals=0,
    )

    return pl.pallas_call(
        kernel,
        out_shape=jax.ShapeDtypeStruct((B, M), jnp.float32),
        grid_spec=pltpu.PrefetchScalarGridSpec(
            num_scalar_prefetch=0,
            grid=(gi, gj, gk),
            in_specs=[
                pl.BlockSpec((tm, tk), lambda i, j, k: (i, k)),   # x tile
                pl.BlockSpec((tk, tn), lambda i, j, k: (k, j)),   # w tile
                pl.BlockSpec((1, tn), lambda i, j, k: (0, j)),    # bias tile
            ],
            out_specs=pl.BlockSpec((tm, tn), lambda i, j, k: (i, j)),
        ),
        compiler_params=pltpu.CompilerParams(**cp_kwargs),
        cost_estimate=cost,
    )(x, w, b2d)


if __name__ == "__main__":
    # Small shapes consistent with Net1(N, M): batch=8, N=256, M=128.
    # Runs as a single grid step, whole problem resident in VMEM.
    B, N, M = 8, 256, 128

    key = jax.random.PRNGKey(0)
    kx, kw, kb = jax.random.split(key, 3)
    x = jax.random.normal(kx, (B, N), dtype=jnp.float32)
    W = jax.random.normal(kw, (N, M), dtype=jnp.float32)  # Parameter torch.randn(N, M)
    b = jax.random.normal(kb, (M,), dtype=jnp.float32)    # Parameter torch.randn(M)

    out = jax.block_until_ready(addmm(x, W, b))
    ref = x @ W + b
    assert out.shape == (B, M)
    assert jnp.allclose(out, ref, atol=1e-4, rtol=1e-4), "mismatch vs reference"

    # Exercise the un-padded tail paths: partial B/M output blocks
    # (store-masked) and the in-kernel K-tail masking (N % tk != 0).
    B2, N2, M2 = 10, 200, 130
    k2x, k2w, k2b = jax.random.split(jax.random.PRNGKey(1), 3)
    x2 = jax.random.normal(k2x, (B2, N2), dtype=jnp.float32)
    W2 = jax.random.normal(k2w, (N2, M2), dtype=jnp.float32)
    b2 = jax.random.normal(k2b, (M2,), dtype=jnp.float32)
    out2 = jax.block_until_ready(addmm(x2, W2, b2))
    ref2 = x2 @ W2 + b2
    assert out2.shape == (B2, M2)
    assert jnp.allclose(out2, ref2, atol=1e-4, rtol=1e-4), "mismatch vs reference (tails)"

    print("KERNEL_OK")
</pallas_src>

<mosaic_0001>
module attributes {stable_mosaic.version = 11 : i64} {
  func.func @_addmm_kernel(%arg0: i32, %arg1: i32, %arg2: i32, %arg3: memref<8x256xf32, #tpu.memory_space<vmem>>, %arg4: memref<256x128xf32, #tpu.memory_space<vmem>>, %arg5: memref<1x128xf32, #tpu.memory_space<vmem>>, %arg6: memref<8x128xf32, #tpu.memory_space<vmem>>) attributes {dimension_semantics = [#tpu.dimension_semantics<parallel>, #tpu.dimension_semantics<parallel>, #tpu.dimension_semantics<arbitrary>], iteration_bounds = array<i64: 1, 1, 1>, scalar_prefetch = 0 : i64, scratch_operands = 0 : i64, tpu.core_type = #tpu.core_type<tc>, window_params = [{transform_indices = @transform_0, window_bounds = array<i64: 8, 256>}, {transform_indices = @transform_1, window_bounds = array<i64: 256, 128>}, {transform_indices = @transform_2, window_bounds = array<i64: 1, 128>}, {transform_indices = @transform_3, window_bounds = array<i64: 8, 128>}]} {
    %c0_i32 = arith.constant 0 : i32
    %0 = arith.cmpi eq, %arg2, %c0_i32 : i32
    %1 = arith.extui %0 : i1 to i32
    %c0_i32_0 = arith.constant 0 : i32
    %2 = arith.cmpi ne, %1, %c0_i32_0 : i32
    scf.if %2 {
      %c0_8 = arith.constant 0 : index
      %c0_9 = arith.constant 0 : index
      %9 = vector.load %arg5[%c0_8, %c0_9] : memref<1x128xf32, #tpu.memory_space<vmem>>, vector<1x128xf32>
      %10 = vector.shape_cast %9 : vector<1x128xf32> to vector<1x128xf32>
      %11 = vector.broadcast %10 : vector<1x128xf32> to vector<8x128xf32>
      %c0_10 = arith.constant 0 : index
      %c0_11 = arith.constant 0 : index
      %12 = vector.load %arg6[%c0_10, %c0_11] : memref<8x128xf32, #tpu.memory_space<vmem>>, vector<8x128xf32>
      tpu.vector_store %arg6[%c0_10, %c0_11], %11 {strides = array<i32>} : memref<8x128xf32, #tpu.memory_space<vmem>>, vector<8x128xf32>,
    } else {
    }
    %c0 = arith.constant 0 : index
    %c0_1 = arith.constant 0 : index
    %3 = vector.load %arg3[%c0, %c0_1] : memref<8x256xf32, #tpu.memory_space<vmem>>, vector<8x256xf32>
    %c0_2 = arith.constant 0 : index
    %c0_3 = arith.constant 0 : index
    %4 = vector.load %arg4[%c0_2, %c0_3] : memref<256x128xf32, #tpu.memory_space<vmem>>, vector<256x128xf32>
    %c0_4 = arith.constant 0 : index
    %c0_5 = arith.constant 0 : index
    %5 = vector.load %arg6[%c0_4, %c0_5] : memref<8x128xf32, #tpu.memory_space<vmem>>, vector<8x128xf32>
    %cst = arith.constant dense<0.000000e+00> : vector<8x128xf32>
    %6 = tpu.matmul %3, %4, %cst {dimension_numbers = #tpu.dot_dimension_numbers<[1], [0], [0], [1], [0, 0, 1, 1], [], []>} : vector<8x256xf32>, vector<256x128xf32>, vector<8x128xf32> -> vector<8x128xf32>
    %7 = arith.addf %5, %6 : vector<8x128xf32>
    %c0_6 = arith.constant 0 : index
    %c0_7 = arith.constant 0 : index
    %8 = vector.load %arg6[%c0_6, %c0_7] : memref<8x128xf32, #tpu.memory_space<vmem>>, vector<8x128xf32>
    tpu.vector_store %arg6[%c0_6, %c0_7], %7 {strides = array<i32>} : memref<8x128xf32, #tpu.memory_space<vmem>>, vector<8x128xf32>,
    return
  }
  func.func @transform_0(%arg0: i32, %arg1: i32, %arg2: i32) -> (i32, i32) {
    %c0_i32 = arith.constant 0 : i32
    return %arg0, %arg2 : i32, i32
  }
  func.func @transform_1(%arg0: i32, %arg1: i32, %arg2: i32) -> (i32, i32) {
    %c0_i32 = arith.constant 0 : i32
    return %arg2, %arg1 : i32, i32
  }
  func.func @transform_2(%arg0: i32, %arg1: i32, %arg2: i32) -> (i32, i32) {
    %c0_i32 = arith.constant 0 : i32
    %c0_i32_0 = arith.constant 0 : i32
    return %c0_i32, %arg1 : i32, i32
  }
  func.func @transform_3(%arg0: i32, %arg1: i32, %arg2: i32) -> (i32, i32) {
    %c0_i32 = arith.constant 0 : i32
    return %arg0, %arg1 : i32, i32
  }
}

</mosaic_0001>

<bundles_post_ra>
// kernel: addmm.1
= control target key start
LH: loop header
LB: loop body
LE: loop exit
PB: predicated region body
PF: predicated region fallthrough
CT: control target
= control target key end

     0   :  { %8 = vsyncpa [#allocation3], 0  ;;  %s320_s0 = inlined_call_operand.hbm [shape: f32[8,256], index: 0, kind: input, shape index: {}]   ;;  %s321_s1 = inlined_call_operand.hbm [shape: f32[256,128], index: 1, kind: input, shape index: {}]   ;;  %s322_s2 = inlined_call_operand.vmem [shape: f32[1,128], index: 2, kind: input, shape index: {}]   ;;  %s323_s3 = inlined_call_operand.hbm [shape: f32[8,128], index: 3, kind: output, shape index: {}]  }
   0x1   :  { %9 = vsyncpa [#allocation6], 0 }
   0x2   :  { %10 = vsyncpa [#allocation4], 0  ;;  %s283_s12 = smov [#allocation2]   ;;  %s284_s14 = smov [#allocation5]  }
   0x3   :  { %s17_s13 = sshll.u32 %s283_s12, 4  ;;  %s26_s15 = sshll.u32 %s284_s14, 4  ;;  %s18_s13 = int_to_ptr.vmem [resolvable:$true] %s17_s13  ;;  %s27_s15 = int_to_ptr.vmem [resolvable:$true] %s26_s15 }
   0x4   :  { %s225_s16 = scalar_lea.vmem %s18_s13, 256  ;;  %p230_p1 = scmp.lt.s32.totalorder %s18_s13, %s18_s13 }
   0x5   :  { %p226_p0 = scmp.ne.s32.totalorder %s18_s13, %s225_s16  ;;  %p231_p2 = scmp.lt.s32.totalorder %s225_s16, %s225_s16 }
   0x7   :  { %p232_p3 = por %p231_p2, %p230_p1 }
   0x9   :  { %p233_p4 = pnand %p232_p3, %p226_p0 }
   0xb   :  { %236 = shalt.err (!%p233_p4)
}
   0xc   :  { %20 = dma.hbm_to_vmem [thread:$0]  %s320_s0, 256, %s18_s13, [#allocation3]  }
   0xd   :  { %s245_s19 = scalar_lea.vmem %s27_s15, 4096  ;;  %p250_p6 = scmp.lt.s32.totalorder %s27_s15, %s27_s15 }
   0xe   :  { %p246_p5 = scmp.ne.s32.totalorder %s27_s15, %s245_s19  ;;  %p251_p7 = scmp.lt.s32.totalorder %s245_s19, %s245_s19 }
  0x10   :  { %p252_p8 = por %p251_p7, %p250_p6 }
  0x12   :  { %p253_p9 = pnand %p252_p8, %p246_p5 }
  0x14   :  { %256 = shalt.err (!%p253_p9)
}
  0x15   :  { %s285_s20 = smov 128   ;;  %s286_s21 = smov 8  }
  0x16   :  { %32 = dma.hbm_to_vmem [thread:$0]  %s321_s1, 4096, %s27_s15, [#allocation6], %s285_s20, %s285_s20, %s286_s21  }
  0x17   :  { %277 = dma.done.wait [#allocation3], 256  }
  0x18   :  { %278 = vsyncadd [#allocation3], 4294967040 }
  0x19   :  { %279 = dma.done.wait [#allocation6], 4096  }
  0x1a   :  { %280 = vsyncadd [#allocation6], 4294963200  ;;  %v86_v0 = vld [vmem:[#allocation5 + $0xf8] sm:$0xff]  ;;  %v85_v2 = vld [vmem:[#allocation5 + $0xf0] sm:$0xff]  ;;  %s287_s24 = smov [#allocation7]  }
  0x1b   :  { %v70_v1 = vld [vmem:[#allocation5 + $0x78] sm:$0xff]  ;;  %177 = vmatprep.subr.mxu0 %v86_v0  ;;  %v69_v3 = vld [vmem:[#allocation5 + $0x70] sm:$0xff]  ;;  %v84_v4 = vld [vmem:[#allocation5 + $0xe8] sm:$0xff]  ;;  %s166_s25 = sshll.u32 %s287_s24, 4  ;;  %s167_s25 = int_to_ptr.vmem [resolvable:$true] %s166_s25 }
  0x1c   :  { %178 = vmatpush3.msra.mxu0 %v70_v1  ;;  %v68_v5 = vld [vmem:[#allocation5 + $0x68] sm:$0xff]  ;;  %v83_v6 = vld [vmem:[#allocation5 + $0xe0] sm:$0xff]  ;;  %v82_v8 = vld [vmem:[#allocation5 + $0xd8] sm:$0xff]  ;;  %s257_s26 = scalar_lea.vmem %s167_s25, 128  ;;  %p262_p11 = scmp.lt.s32.totalorder %s167_s25, %s167_s25 }
  0x1d   :  { %179 = vmatprep.subr.mxu0 %v85_v2  ;;  %v67_v7 = vld [vmem:[#allocation5 + $0x60] sm:$0xff]  ;;  %v66_v9 = vld [vmem:[#allocation5 + $0x58] sm:$0xff]  ;;  %v81_v10 = vld [vmem:[#allocation5 + $0xd0] sm:$0xff]  ;;  %p258_p10 = scmp.ne.s32.totalorder %s167_s25, %s257_s26  ;;  %p263_p12 = scmp.lt.s32.totalorder %s257_s26, %s257_s26 }
  0x1e   :  { %180 = vmatpush3.msra.mxu0 %v69_v3  ;;  %v65_v11 = vld [vmem:[#allocation5 + $0x50] sm:$0xff]  ;;  %v80_v12 = vld [vmem:[#allocation5 + $0xc8] sm:$0xff]  ;;  %v54_v13 = vld [vmem:[#allocation2 + $0x8] sm:$0xff] }
  0x1f   :  { %181 = vmatprep.subr.mxu0 %v84_v4  ;;  %v64_v14 = vld [vmem:[#allocation5 + $0x48] sm:$0xff]  ;;  %152 = vmatprep.mubr.f32.mxu0 %v54_v13  ;;  %v79_v15 = vld [vmem:[#allocation5 + $0xc0] sm:$0xff]  ;;  %v78_v17 = vld [vmem:[#allocation5 + $0xb8] sm:$0xff]  ;;  %p264_p13 = por %p263_p12, %p262_p11 }
  0x20   :  { %182 = vmatpush3.msra.mxu0 %v68_v5  ;;  %v63_v16 = vld [vmem:[#allocation5 + $0x40] sm:$0xff]  ;;  %v62_v18 = vld [vmem:[#allocation5 + $0x38] sm:$0xff]  ;;  %v77_v19 = vld [vmem:[#allocation5 + $0xb0] sm:$0xff] }
  0x21   :  { %183 = vmatprep.subr.mxu0 %v83_v6  ;;  %v61_v20 = vld [vmem:[#allocation5 + $0x30] sm:$0xff]  ;;  %v76_v21 = vld [vmem:[#allocation5 + $0xa8] sm:$0xff]  ;;  %v75_v23 = vld [vmem:[#allocation5 + $0xa0] sm:$0xff]  ;;  %p265_p0 = pnand %p264_p13, %p258_p10 }
  0x22   :  { %184 = vmatpush3.msra.mxu0 %v67_v7  ;;  %v60_v22 = vld [vmem:[#allocation5 + $0x28] sm:$0xff]  ;;  %v59_v24 = vld [vmem:[#allocation5 + $0x20] sm:$0xff]  ;;  %v74_v25 = vld [vmem:[#allocation5 + $0x98] sm:$0xff] }
  0x23   :  { %185 = vmatprep.subr.mxu0 %v82_v8  ;;  %v58_v26 = vld [vmem:[#allocation5 + $0x18] sm:$0xff]  ;;  %v73_v27 = vld [vmem:[#allocation5 + $0x90] sm:$0xff]  ;;  %v72_v29 = vld [vmem:[#allocation5 + $0x88] sm:$0xff] }
  0x24   :  { %186 = vmatpush3.msra.mxu0 %v66_v9  ;;  %v57_v28 = vld [vmem:[#allocation5 + $0x10] sm:$0xff]  ;;  %v56_v30 = vld [vmem:[#allocation5 + $0x8] sm:$0xff]  ;;  %v71_v31 = vld [vmem:[#allocation5 + $0x80] sm:$0xff] }
  0x25   :  { %187 = vmatprep.subr.mxu0 %v81_v10  ;;  %v55_v32 = vld [vmem:[#allocation5] sm:$0xff]  ;;  %v53_v33 = vld [vmem:[#allocation2] sm:$0xff] }
  0x26   :  { %188 = vmatpush3.msra.mxu0 %v65_v11  ;;  %v176_v35 = vld [vmem:[%s322_s2] ss:$0 sm:$0xff] }
  0x27   :  { %189 = vmatprep.subr.mxu0 %v80_v12 }
  0x28   :  { %190 = vmatpush3.msra.mxu0 %v64_v14 }
  0x29   :  { %191 = vmatprep.subr.mxu0 %v79_v15 }
  0x2a   :  { %192 = vmatpush3.msra.mxu0 %v63_v16 }
  0x2b   :  { %193 = vmatprep.subr.mxu0 %v78_v17 }
  0x2c   :  { %194 = vmatpush3.msra.mxu0 %v62_v18 }
  0x2d   :  { %195 = vmatprep.subr.mxu0 %v77_v19 }
  0x2e   :  { %196 = vmatpush3.msra.mxu0 %v61_v20 }
  0x2f   :  { %197 = vmatprep.subr.mxu0 %v76_v21 }
  0x30   :  { %198 = vmatpush3.msra.mxu0 %v60_v22 }
  0x31   :  { %199 = vmatprep.subr.mxu0 %v75_v23 }
  0x32   :  { %200 = vmatpush3.msra.mxu0 %v59_v24 }
  0x33   :  { %201 = vmatprep.subr.mxu0 %v74_v25 }
  0x34   :  { %202 = vmatpush3.msra.mxu0 %v58_v26 }
  0x35   :  { %203 = vmatprep.subr.mxu0 %v73_v27 }
  0x36   :  { %204 = vmatpush3.msra.mxu0 %v57_v28 }
  0x37   :  { %205 = vmatprep.subr.mxu0 %v72_v29 }
  0x38   :  { %206 = vmatpush3.msra.mxu0 %v56_v30 }
  0x39   :  { %207 = vmatprep.subr.mxu0 %v71_v31 }
  0x3a   :  { %208 = vmatpush3.msra.mxu0 %v55_v32 }
  0x3b   :  { %153 = vmatmul.mubr.f32.vlgmr.msra.gmra.mxu0 %v53_v33 }
  0xfb   :  { %v209_v34 = vpop.f32.mrf.mxu0 }
  0xfd   :  { %v210_v36 = vpop.f32.mrf.mxu0 }
  0xfe   :  { %v211_v37 = vadd.f32 %v210_v36, %v209_v34 }
 0x100   :  { %v158_v38 = vadd.f32 %v211_v37, %v176_v35 }
 0x102   :  { %159 = vst [vmem:[#allocation7] sm:$0xff] %v158_v38 }
 0x103   :  { %268 = shalt.err (!%p265_p0)
}
 0x104   :  { %169 = dma.vmem_to_hbm [thread:$0]  %s167_s25, 128, %s323_s3, [#allocation4]  }
 0x105   :  { %281 = dma.done.wait [#allocation4], 128  }
 0x106   :  { %282 = vsyncadd [#allocation4], 4294967168 }
 0x107   :  { %173 = vsyncpa [#allocation3], 1 }
 0x108   :  { %174 = vsyncpa [#allocation6], 1 }
 0x109   :  { %175 = vsyncpa [#allocation4], 1 }

</bundles_post_ra>
